<compile_context>
chip_gen: v6e
topology: v6e:2x2x1
jax: 0.10.0
libtpu: 0.0.40
codegen_flags: <defaults>
</compile_context>

<pallas_src>
import functools

import jax
import jax.numpy as jnp
import numpy as np
from jax.experimental import pallas as pl
from jax.experimental.pallas import tpu as pltpu

_NEG_LARGE = -1e30   # finite "-inf": online-max rescaling never sees inf-inf
_EPS = 1e-8          # torch.nn.CosineSimilarity eps
_DW_FLOOR = 1e-45    # torch: distance_weighting.clamp(min=1e-45)


def _fast_moco_kernel(q_ref, k_ref, mqt_ref, aux_ref, temp_ref, o_ref,
                      a2_ref, lp_ref, m1_ref, s1_ref, cnt_ref, mM_ref, lL_ref,
                      *, dim, lower_sq, upper_sq, diva_fixed):
    p = pl.program_id(1)          # 0: distance-weighting stats, 1: logits + LSE
    t = pl.program_id(2)          # queue tile index
    nt = pl.num_programs(2)

    temp = jnp.clip(temp_ref[0, 0], 1e-8, 1e4)
    inv_t = 1.0 / temp

    # ---- per-row quantities, once per BS block (hoisted out of the NK loop) --
    @pl.when((p == 0) & (t == 0))
    def _init_pass0():
        q = q_ref[...].astype(jnp.float32)
        k = k_ref[...].astype(jnp.float32)
        qn2 = jnp.sum(q * q, axis=-1, keepdims=True)             # (BSb, 1)
        a2_ref[...] = qn2 / jnp.maximum(qn2, _EPS)                # cos(q, q)
        lp_ref[...] = jnp.sum(q * k, axis=-1, keepdims=True) * inv_t
        m1_ref[...] = jnp.full_like(qn2, _NEG_LARGE)
        s1_ref[...] = jnp.zeros_like(qn2)
        cnt_ref[...] = jnp.zeros_like(qn2)

    @pl.when((p == 1) & (t == 0))
    def _init_pass1():
        lp = lp_ref[...]
        mM_ref[...] = lp                                          # positive logit
        lL_ref[...] = jnp.ones_like(lp)                           # exp(lp - lp)

    # ---- shared per-tile math (both passes) ---------------------------------
    # Queue is pre-transposed: plain (BSb,DIM)@(DIM,T) MXU matmul, bf16 in /
    # f32 accumulate, no relayout of the big operand.
    ab = jnp.dot(q_ref[...], mqt_ref[...], preferred_element_type=jnp.float32)

    b2 = aux_ref[0:1, :]            # (1, T) precomputed cos(m, m)
    valid = aux_ref[1:2, :]         # (1, T) 1.0 = real queue row, 0.0 = padding
    a2 = a2_ref[...]                # (BSb, 1)

    # Squared-distance space: d2 == clamp(clamp(dist,0), lower)^2 (single max),
    # log(distance) == 0.5*log(d2), cutoff test on d2 (no sqrt on the EUP).
    d2 = jnp.maximum(-2.0 * ab + a2 + b2, lower_sq)
    # NOTE: matches the PyTorch forward exactly -- exactly antipodal pairs
    # (d2 >= 4) give inf/NaN in both kernel and reference.
    dw_log = ((0.5 * (2.0 - dim)) * jnp.log(d2)
              - (0.5 * (dim - 3.0)) * jnp.log(1.0 - 0.25 * d2))
    dw_log = jnp.where(valid > 0.0, dw_log, _NEG_LARGE)           # drop padding

    # ---- pass 0: distance-weighting softmax statistics ----------------------
    @pl.when(p == 0)
    def _pass0():
        if diva_fixed:
            # row-wise online max / sum-of-exp (flash-attention style)
            keep = d2 <= upper_sq
            m_old = m1_ref[...]
            m_new = jnp.maximum(m_old, jnp.max(dw_log, axis=1, keepdims=True))
            e = jnp.where(keep, jnp.exp(dw_log - m_new), 0.0)
            s1_ref[...] = (s1_ref[...] * jnp.exp(m_old - m_new)
                           + jnp.sum(e, axis=1, keepdims=True))
            # count real-but-masked entries: carries the reference's 1e-45 floor
            # into the row normalizer (fully-masked rows stay finite where the
            # reference does).
            cnt_ref[...] += jnp.sum(valid * (1.0 - keep.astype(jnp.float32)),
                                    axis=1, keepdims=True)
            m1_ref[...] = m_new
        else:
            # global max, replicated over the (BSb, 1) scratch rows
            gmax = jnp.max(jnp.max(dw_log, axis=1, keepdims=True),
                           axis=0, keepdims=True)                 # (1, 1)
            m1_ref[...] = jnp.maximum(m1_ref[...], gmax)

    # ---- pass 1: weighted negative logits folded into an online LSE ---------
    @pl.when(p == 1)
    def _pass1():
        keep = d2 <= upper_sq
        e = jnp.where(keep, jnp.exp(dw_log - m1_ref[...]), 0.0)
        e = jnp.maximum(e, _DW_FLOOR)                 # torch clamp(min=1e-45)
        if diva_fixed:
            denom = s1_ref[...] + _DW_FLOOR * cnt_ref[...]
            ln = ab * e * (inv_t / denom)
        else:
            # column normalization is tile-local once the global max is known
            ln = ab * (e / jnp.sum(e, axis=0, keepdims=True)) * inv_t
        ln = jnp.where(valid > 0.0, ln, _NEG_LARGE)   # padding adds no LSE term
        m_old = mM_ref[...]
        m_new = jnp.maximum(m_old, jnp.max(ln, axis=1, keepdims=True))
        lL_ref[...] = (lL_ref[...] * jnp.exp(m_old - m_new)
                       + jnp.sum(jnp.exp(ln - m_new), axis=1, keepdims=True))
        mM_ref[...] = m_new

    @pl.when((p == 1) & (t == nt - 1))
    def _finalize():
        lse = mM_ref[...] + jnp.log(lL_ref[...])                  # (BSb, 1)
        row_loss = lse - lp_ref[...]                              # CE, target 0
        # lane-dense (last dim 128) output block: unmasked stores
        o_ref[...] = jnp.broadcast_to(row_loss, o_ref.shape)


# --------------------------- wrapper / sizing --------------------------------

def _round_up(x, m):
    return ((x + m - 1) // m) * m


def _vmem_capacity_bytes():
    try:
        info = pltpu.get_tpu_info()
        cap = getattr(info, "vmem_capacity_bytes", None)
        if isinstance(cap, int) and cap > 0:
            return cap
    except Exception:
        pass
    return 64 << 20          # v7x per-core physical: safe lower bound everywhere


def _num_tensorcores():
    try:
        info = pltpu.get_tpu_info()
    except Exception:
        return 1
    for name in ("num_cores", "tensor_cores_per_chip", "num_tensorcores",
                 "core_count"):
        v = getattr(info, name, None)
        if isinstance(v, int) and v > 0:
            return v
    return 1


def _pick_tile_nk(nk, dim, bs_blk, vmem_budget_bytes, cap=4096):
    # per queue row, per pipeline step: double-buffered bf16 queue column,
    # double-buffered aux row (sublane-padded to 8), ~6 live (BSb, T) f32 temps.
    per_row = 2 * 2 * dim + 2 * 8 * 4 + 6 * 4 * max(bs_blk, 8)
    t = int(vmem_budget_bytes * 0.55) // max(per_row, 1)
    t = max(128, min(t, cap))
    t = (t // 128) * 128
    return min(t, max(128, _round_up(nk, 128)))


def fast_moco_loss(query, key, memory_queue, temperature, *,
                   lower_cutoff=0.5, upper_cutoff=1.4, diva_fixed=True,
                   tile_nk=None, num_bs_blocks=None,
                   compute_dtype=jnp.bfloat16, vmem_limit_bytes=None):
    bs, dim = query.shape
    nk, dim2 = memory_queue.shape
    assert key.shape == (bs, dim) and dim2 == dim

    # --- TensorCore split over query rows (v7x megacore). Only the row-wise
    # diva_fixed=True path is separable over BS; the global-max / column-
    # normalized path couples all rows, so it stays on one block.
    if not diva_fixed:
        num_bs_blocks = 1
    if num_bs_blocks is None:
        cores = _num_tensorcores()
        num_bs_blocks = cores if (cores > 1 and bs % (8 * cores) == 0) else 1
    assert bs % num_bs_blocks == 0, (bs, num_bs_blocks)
    bs_blk = bs // num_bs_blocks
    assert num_bs_blocks == 1 or bs_blk % 8 == 0, (bs, num_bs_blocks)

    # --- generation-aware VMEM budget and queue-tile size
    vmem_cap = _vmem_capacity_bytes()
    if vmem_limit_bytes is None:
        vmem_limit_bytes = int(min(0.9 * vmem_cap, 100 << 20))
    if tile_nk is None:
        tile_nk = _pick_tile_nk(nk, dim, bs_blk, vmem_limit_bytes)
    assert tile_nk % 128 == 0 and tile_nk >= 128, tile_nk

    nk_pad = _round_up(nk, tile_nk)
    num_tiles = nk_pad // tile_nk

    q = query.astype(compute_dtype)
    k = key.astype(compute_dtype)

    # Queue-side per-row quantities computed ONCE (not per tile per pass):
    # cos(m, m) with the torch CosineSimilarity eps + a padding-validity mask.
    mq32 = memory_queue.astype(jnp.float32)
    mn2 = jnp.sum(mq32 * mq32, axis=-1)
    b2 = mn2 / jnp.maximum(mn2, _EPS)
    b2 = jnp.pad(b2, (0, nk_pad - nk))
    valid = (jnp.arange(nk_pad) < nk).astype(jnp.float32)
    aux = jnp.stack([b2, valid], axis=0)                          # (2, NK_pad)

    # TODO(synk): in the training loop, store the memory queue as (DIM, NK) so
    # this transpose/pad happens once per queue update, not once per step.
    mq_t = jnp.pad(memory_queue.astype(compute_dtype).T,
                   ((0, 0), (0, nk_pad - nk)))                    # (DIM, NK_pad)

    temp = jnp.asarray(temperature, jnp.float32).reshape(1, 1)

    kernel = functools.partial(
        _fast_moco_kernel,
        dim=float(dim),
        lower_sq=float(max(lower_cutoff, 0.0)) ** 2,
        upper_sq=float(upper_cutoff) ** 2,
        diva_fixed=bool(diva_fixed))

    out = pl.pallas_call(
        kernel,
        out_shape=jax.ShapeDtypeStruct((bs, 128), jnp.float32),
        grid_spec=pltpu.PrefetchScalarGridSpec(
            num_scalar_prefetch=0,
            grid=(num_bs_blocks, 2, num_tiles),
            in_specs=[
                pl.BlockSpec((bs_blk, dim), lambda b, p, t: (b, 0)),     # query
                pl.BlockSpec((bs_blk, dim), lambda b, p, t: (b, 0)),     # key
                pl.BlockSpec((dim, tile_nk), lambda b, p, t: (0, t)),    # queue^T
                pl.BlockSpec((2, tile_nk), lambda b, p, t: (0, t)),      # cos(m,m); valid
                pl.BlockSpec(memory_space=pltpu.MemorySpace.SMEM),       # temperature
            ],
            out_specs=pl.BlockSpec((bs_blk, 128), lambda b, p, t: (b, 0)),
            scratch_shapes=[
                pltpu.VMEM((bs_blk, 1), jnp.float32),   # a2: cos(q, q)
                pltpu.VMEM((bs_blk, 1), jnp.float32),   # lp: l_pos / temp
                pltpu.VMEM((bs_blk, 1), jnp.float32),   # m1: dw-log max (row/global)
                pltpu.VMEM((bs_blk, 1), jnp.float32),   # s1: dw row sum of exp
                pltpu.VMEM((bs_blk, 1), jnp.float32),   # cnt: masked-entry count
                pltpu.VMEM((bs_blk, 1), jnp.float32),   # M: LSE running max
                pltpu.VMEM((bs_blk, 1), jnp.float32),   # L: LSE running sum
            ]),
        compiler_params=pltpu.CompilerParams(
            dimension_semantics=("parallel", "arbitrary", "arbitrary"),
            vmem_limit_bytes=int(vmem_limit_bytes)),
    )(q, k, mq_t, aux, temp)

    # Per-row losses replicated across 128 lanes; overall loss = mean over rows.
    return jnp.mean(out[:, 0])


# --------------------------- pure-JAX reference ------------------------------

def _reference_loss(q, k, mq, temperature, lower_cutoff, upper_cutoff,
                    diva_fixed=True):
    """Pure-JAX mirror of the PyTorch forward (correctness check only)."""
    q = q.astype(jnp.float32)
    k = k.astype(jnp.float32)
    mq = mq.astype(jnp.float32)
    dim = q.shape[-1]
    l_pos = jnp.sum(q * k, axis=-1, keepdims=True)
    l_neg = q @ mq.T
    ab = l_neg
    qn2 = jnp.sum(q * q, -1, keepdims=True)
    a2 = qn2 / jnp.maximum(qn2, _EPS)
    mn2 = jnp.sum(mq * mq, -1, keepdims=True)
    b2 = (mn2 / jnp.maximum(mn2, _EPS)).T
    distances = jnp.maximum(jnp.sqrt(jnp.maximum(-2.0 * ab + a2 + b2, 0.0)),
                            lower_cutoff)
    dw = ((2.0 - dim) * jnp.log(distances)
          - (dim - 3) / 2.0 * jnp.log(1.0 - 0.25 * distances ** 2))
    if diva_fixed:
        dw = jnp.exp(dw - jnp.max(dw, axis=1, keepdims=True))
    else:
        dw = jnp.exp(dw - jnp.max(dw))
    dw = jnp.where(distances > upper_cutoff, 0.0, dw)
    dw = jnp.maximum(dw, _DW_FLOOR)
    if diva_fixed:
        dw = dw / jnp.sum(dw, axis=1, keepdims=True)
    else:
        dw = dw / jnp.sum(dw, axis=0, keepdims=True)
    tclip = jnp.clip(jnp.asarray(temperature, jnp.float32), 1e-8, 1e4)
    logits = jnp.concatenate([l_pos, l_neg * dw], axis=1) / tclip
    lse = jax.scipy.special.logsumexp(logits, axis=1)
    return jnp.mean(lse - logits[:, 0])


if __name__ == "__main__":
    # Small shapes consistent with the module: embeddings (BS, DIM), memory
    # queue (NK, DIM). NK is NOT a tile multiple -> exercises padding + mask.
    BS, DIM, NK = 16, 32, 448
    TILE_NK = 128        # 4 (padded) queue tiles -> exercises the streaming accumulators
    rng = jax.random.PRNGKey(0)
    kq, kk, km = jax.random.split(rng, 3)

    def l2n(x):
        return x / jnp.linalg.norm(x, axis=-1, keepdims=True)

    # MoCo-style L2-normalized embeddings, fed to the kernel as bfloat16
    # (f32 accumulation inside); the reference consumes the same bf16 values.
    query = l2n(jax.random.normal(kq, (BS, DIM), jnp.float32)).astype(jnp.bfloat16)
    key_b = l2n(jax.random.normal(kk, (BS, DIM), jnp.float32)).astype(jnp.bfloat16)
    memq = l2n(jax.random.normal(km, (NK, DIM), jnp.float32)).astype(jnp.bfloat16)

    temperature = 0.07   # diva_moco_temperature (trainable-temp init value)
    # TODO(synk): memory-queue create/update and shuffleBN are training-loop
    # plumbing (dataloader / randperm side effects), not forward compute.

    # diva_fixed=True (row-wise max / row normalization); 2 BS blocks exercises
    # the "parallel" TensorCore-split axis.
    loss = fast_moco_loss(query, key_b, memq, temperature,
                          lower_cutoff=0.5, upper_cutoff=1.4,
                          diva_fixed=True, tile_nk=TILE_NK, num_bs_blocks=2)
    loss = jax.block_until_ready(loss)
    ref = _reference_loss(query, key_b, memq, temperature, 0.5, 1.4, True)
    np.testing.assert_allclose(np.asarray(loss), np.asarray(ref),
                               rtol=1e-4, atol=1e-4)

    # diva_fixed=False (global max / column normalization); single BS block
    # because the global max and column sums couple all query rows.
    loss2 = fast_moco_loss(query, key_b, memq, temperature,
                           lower_cutoff=0.5, upper_cutoff=1.8,
                           diva_fixed=False, tile_nk=TILE_NK)
    loss2 = jax.block_until_ready(loss2)
    ref2 = _reference_loss(query, key_b, memq, temperature, 0.5, 1.8, False)
    np.testing.assert_allclose(np.asarray(loss2), np.asarray(ref2),
                               rtol=1e-4, atol=1e-4)

    print("KERNEL_OK")
</pallas_src>

<mosaic_0001>
module attributes {stable_mosaic.version = 11 : i64} {
  func.func @_fast_moco_kernel(%arg0: i32, %arg1: i32, %arg2: i32, %arg3: memref<8x32xbf16, #tpu.memory_space<vmem>>, %arg4: memref<8x32xbf16, #tpu.memory_space<vmem>>, %arg5: memref<32x128xbf16, #tpu.memory_space<vmem>>, %arg6: memref<2x128xf32, #tpu.memory_space<vmem>>, %arg7: memref<1x1xf32, #tpu.memory_space<smem>>, %arg8: memref<8x128xf32, #tpu.memory_space<vmem>>, %arg9: memref<8x1xf32, #tpu.memory_space<vmem>>, %arg10: memref<8x1xf32, #tpu.memory_space<vmem>>, %arg11: memref<8x1xf32, #tpu.memory_space<vmem>>, %arg12: memref<8x1xf32, #tpu.memory_space<vmem>>, %arg13: memref<8x1xf32, #tpu.memory_space<vmem>>, %arg14: memref<8x1xf32, #tpu.memory_space<vmem>>, %arg15: memref<8x1xf32, #tpu.memory_space<vmem>>) attributes {dimension_semantics = [#tpu.dimension_semantics<parallel>, #tpu.dimension_semantics<arbitrary>, #tpu.dimension_semantics<arbitrary>], iteration_bounds = array<i64: 2, 2, 4>, scalar_prefetch = 0 : i64, scratch_operands = 7 : i64, tpu.core_type = #tpu.core_type<tc>, window_params = [{transform_indices = @transform_0, window_bounds = array<i64: 8, 32>}, {transform_indices = @transform_1, window_bounds = array<i64: 8, 32>}, {transform_indices = @transform_2, window_bounds = array<i64: 32, 128>}, {transform_indices = @transform_3, window_bounds = array<i64: 2, 128>}, {transform_indices = @transform_4, window_bounds = array<i64: 1, 1>}, {transform_indices = @transform_5, window_bounds = array<i64: 8, 128>}]} {
    %c0 = arith.constant 0 : index
    %c0_0 = arith.constant 0 : index
    %0 = memref.load %arg7[%c0, %c0_0] : memref<1x1xf32, #tpu.memory_space<smem>>
    %cst = arith.constant 9.99999993E-9 : f32
    %cst_1 = arith.constant 1.000000e+04 : f32
    %1 = arith.maximumf %cst, %0 : f32
    %2 = arith.minimumf %cst_1, %1 : f32
    %cst_2 = arith.constant 1.000000e+00 : f32
    %3 = arith.divf %cst_2, %2 : f32
    %c0_i32 = arith.constant 0 : i32
    %4 = arith.cmpi eq, %arg1, %c0_i32 : i32
    %c0_i32_3 = arith.constant 0 : i32
    %5 = arith.cmpi eq, %arg2, %c0_i32_3 : i32
    %6 = arith.andi %4, %5 : i1
    %7 = arith.extui %6 : i1 to i32
    %c0_i32_4 = arith.constant 0 : i32
    %8 = arith.cmpi ne, %7, %c0_i32_4 : i32
    scf.if %8 {
      %c0_31 = arith.constant 0 : index
      %c0_32 = arith.constant 0 : index
      %56 = vector.load %arg3[%c0_31, %c0_32] : memref<8x32xbf16, #tpu.memory_space<vmem>>, vector<8x32xbf16>
      %57 = arith.extf %56 : vector<8x32xbf16> to vector<8x32xf32>
      %c0_33 = arith.constant 0 : index
      %c0_34 = arith.constant 0 : index
      %58 = vector.load %arg4[%c0_33, %c0_34] : memref<8x32xbf16, #tpu.memory_space<vmem>>, vector<8x32xbf16>
      %59 = arith.extf %58 : vector<8x32xbf16> to vector<8x32xf32>
      %60 = arith.mulf %57, %57 : vector<8x32xf32>
      %cst_35 = arith.constant dense<0.000000e+00> : vector<8xf32>
      %61 = vector.multi_reduction <add>, %60, %cst_35 [1] : vector<8x32xf32> to vector<8xf32>
      %62 = vector.shape_cast %61 : vector<8xf32> to vector<8x1xf32>
      %cst_36 = arith.constant 9.99999993E-9 : f32
      %63 = vector.broadcast %cst_36 : f32 to vector<8x1xf32>
      %64 = arith.maximumf %62, %63 : vector<8x1xf32>
      %65 = arith.divf %62, %64 : vector<8x1xf32>
      %c0_37 = arith.constant 0 : index
      %c0_38 = arith.constant 0 : index
      %66 = vector.load %arg9[%c0_37, %c0_38] : memref<8x1xf32, #tpu.memory_space<vmem>>, vector<8x1xf32>
      tpu.vector_store %arg9[%c0_37, %c0_38], %65 {strides = array<i32>} : memref<8x1xf32, #tpu.memory_space<vmem>>, vector<8x1xf32>,
      %67 = arith.mulf %57, %59 : vector<8x32xf32>
      %cst_39 = arith.constant dense<0.000000e+00> : vector<8xf32>
      %68 = vector.multi_reduction <add>, %67, %cst_39 [1] : vector<8x32xf32> to vector<8xf32>
      %69 = vector.shape_cast %68 : vector<8xf32> to vector<8x1xf32>
      %70 = vector.broadcast %3 : f32 to vector<8x1xf32>
      %71 = arith.mulf %69, %70 : vector<8x1xf32>
      %c0_40 = arith.constant 0 : index
      %c0_41 = arith.constant 0 : index
      %72 = vector.load %arg10[%c0_40, %c0_41] : memref<8x1xf32, #tpu.memory_space<vmem>>, vector<8x1xf32>
      tpu.vector_store %arg10[%c0_40, %c0_41], %71 {strides = array<i32>} : memref<8x1xf32, #tpu.memory_space<vmem>>, vector<8x1xf32>,
      %cst_42 = arith.constant -1.000000e+30 : f32
      %73 = vector.broadcast %cst_42 : f32 to vector<8x1xf32>
      %c0_43 = arith.constant 0 : index
      %c0_44 = arith.constant 0 : index
      %74 = vector.load %arg11[%c0_43, %c0_44] : memref<8x1xf32, #tpu.memory_space<vmem>>, vector<8x1xf32>
      tpu.vector_store %arg11[%c0_43, %c0_44], %73 {strides = array<i32>} : memref<8x1xf32, #tpu.memory_space<vmem>>, vector<8x1xf32>,
      %cst_45 = arith.constant 0.000000e+00 : f32
      %75 = vector.broadcast %cst_45 : f32 to vector<8x1xf32>
      %c0_46 = arith.constant 0 : index
      %c0_47 = arith.constant 0 : index
      %76 = vector.load %arg12[%c0_46, %c0_47] : memref<8x1xf32, #tpu.memory_space<vmem>>, vector<8x1xf32>
      tpu.vector_store %arg12[%c0_46, %c0_47], %75 {strides = array<i32>} : memref<8x1xf32, #tpu.memory_space<vmem>>, vector<8x1xf32>,
      %cst_48 = arith.constant 0.000000e+00 : f32
      %77 = vector.broadcast %cst_48 : f32 to vector<8x1xf32>
      %c0_49 = arith.constant 0 : index
      %c0_50 = arith.constant 0 : index
      %78 = vector.load %arg13[%c0_49, %c0_50] : memref<8x1xf32, #tpu.memory_space<vmem>>, vector<8x1xf32>
      tpu.vector_store %arg13[%c0_49, %c0_50], %77 {strides = array<i32>} : memref<8x1xf32, #tpu.memory_space<vmem>>, vector<8x1xf32>,
    } else {
    }
    %c1_i32 = arith.constant 1 : i32
    %9 = arith.cmpi eq, %arg1, %c1_i32 : i32
    %c0_i32_5 = arith.constant 0 : i32
    %10 = arith.cmpi eq, %arg2, %c0_i32_5 : i32
    %11 = arith.andi %9, %10 : i1
    %12 = arith.extui %11 : i1 to i32
    %c0_i32_6 = arith.constant 0 : i32
    %13 = arith.cmpi ne, %12, %c0_i32_6 : i32
    scf.if %13 {
      %c0_31 = arith.constant 0 : index
      %c0_32 = arith.constant 0 : index
      %56 = vector.load %arg10[%c0_31, %c0_32] : memref<8x1xf32, #tpu.memory_space<vmem>>, vector<8x1xf32>
      %c0_33 = arith.constant 0 : index
      %c0_34 = arith.constant 0 : index
      %57 = vector.load %arg14[%c0_33, %c0_34] : memref<8x1xf32, #tpu.memory_space<vmem>>, vector<8x1xf32>
      tpu.vector_store %arg14[%c0_33, %c0_34], %56 {strides = array<i32>} : memref<8x1xf32, #tpu.memory_space<vmem>>, vector<8x1xf32>,
      %cst_35 = arith.constant 1.000000e+00 : f32
      %58 = vector.broadcast %cst_35 : f32 to vector<8x1xf32>
      %c0_36 = arith.constant 0 : index
      %c0_37 = arith.constant 0 : index
      %59 = vector.load %arg15[%c0_36, %c0_37] : memref<8x1xf32, #tpu.memory_space<vmem>>, vector<8x1xf32>
      tpu.vector_store %arg15[%c0_36, %c0_37], %58 {strides = array<i32>} : memref<8x1xf32, #tpu.memory_space<vmem>>, vector<8x1xf32>,
    } else {
    }
    %c0_7 = arith.constant 0 : index
    %c0_8 = arith.constant 0 : index
    %14 = vector.load %arg3[%c0_7, %c0_8] : memref<8x32xbf16, #tpu.memory_space<vmem>>, vector<8x32xbf16>
    %c0_9 = arith.constant 0 : index
    %c0_10 = arith.constant 0 : index
    %15 = vector.load %arg5[%c0_9, %c0_10] : memref<32x128xbf16, #tpu.memory_space<vmem>>, vector<32x128xbf16>
    %cst_11 = arith.constant dense<0.000000e+00> : vector<8x128xf32>
    %16 = tpu.matmul %14, %15, %cst_11 {dimension_numbers = #tpu.dot_dimension_numbers<[1], [0], [0], [1], [0, 0, 1, 1], [], []>} : vector<8x32xbf16>, vector<32x128xbf16>, vector<8x128xf32> -> vector<8x128xf32>
    %c0_12 = arith.constant 0 : index
    %c0_13 = arith.constant 0 : index
    %17 = vector.load %arg6[%c0_12, %c0_13] : memref<2x128xf32, #tpu.memory_space<vmem>>, vector<1x128xf32>
    %c1 = arith.constant 1 : index
    %c0_14 = arith.constant 0 : index
    %18 = vector.load %arg6[%c1, %c0_14] : memref<2x128xf32, #tpu.memory_space<vmem>>, vector<1x128xf32>
    %c0_15 = arith.constant 0 : index
    %c0_16 = arith.constant 0 : index
    %19 = vector.load %arg9[%c0_15, %c0_16] : memref<8x1xf32, #tpu.memory_space<vmem>>, vector<8x1xf32>
    %cst_17 = arith.constant -2.000000e+00 : f32
    %20 = vector.broadcast %cst_17 : f32 to vector<8x128xf32>
    %21 = arith.mulf %20, %16 : vector<8x128xf32>
    %22 = vector.broadcast %19 : vector<8x1xf32> to vector<8x128xf32>
    %23 = arith.addf %21, %22 : vector<8x128xf32>
    %24 = vector.broadcast %17 : vector<1x128xf32> to vector<8x128xf32>
    %25 = arith.addf %23, %24 : vector<8x128xf32>
    %cst_18 = arith.constant 2.500000e-01 : f32
    %26 = vector.broadcast %cst_18 : f32 to vector<8x128xf32>
    %27 = arith.maximumf %25, %26 : vector<8x128xf32>
    %28 = math.log %27 : vector<8x128xf32>
    %cst_19 = arith.constant -1.500000e+01 : f32
    %29 = vector.broadcast %cst_19 : f32 to vector<8x128xf32>
    %30 = arith.mulf %29, %28 : vector<8x128xf32>
    %cst_20 = arith.constant 2.500000e-01 : f32
    %31 = vector.broadcast %cst_20 : f32 to vector<8x128xf32>
    %32 = arith.mulf %31, %27 : vector<8x128xf32>
    %cst_21 = arith.constant 1.000000e+00 : f32
    %33 = vector.broadcast %cst_21 : f32 to vector<8x128xf32>
    %34 = arith.subf %33, %32 : vector<8x128xf32>
    %35 = math.log %34 : vector<8x128xf32>
    %cst_22 = arith.constant 1.450000e+01 : f32
    %36 = vector.broadcast %cst_22 : f32 to vector<8x128xf32>
    %37 = arith.mulf %36, %35 : vector<8x128xf32>
    %38 = arith.subf %30, %37 : vector<8x128xf32>
    %cst_23 = arith.constant 0.000000e+00 : f32
    %39 = vector.broadcast %cst_23 : f32 to vector<1x128xf32>
    %40 = arith.cmpf ogt, %18, %39 : vector<1x128xf32>
    %cst_24 = arith.constant -1.000000e+30 : f32
    %41 = vector.shape_cast %40 : vector<1x128xi1> to vector<1x128xi1>
    %42 = vector.broadcast %41 : vector<1x128xi1> to vector<8x128xi1>
    %43 = vector.broadcast %cst_24 : f32 to vector<8x128xf32>
    %44 = arith.select %42, %38, %43 : vector<8x128xi1>, vector<8x128xf32>
    %c0_i32_25 = arith.constant 0 : i32
    %45 = arith.cmpi eq, %arg1, %c0_i32_25 : i32
    %46 = arith.extui %45 : i1 to i32
    %c0_i32_26 = arith.constant 0 : i32
    %47 = arith.cmpi ne, %46, %c0_i32_26 : i32
    scf.if %47 {
      %cst_31 = arith.constant 1.960000e+00 : f32
      %56 = vector.broadcast %cst_31 : f32 to vector<8x128xf32>
      %57 = arith.cmpf ole, %27, %56 : vector<8x128xf32>
      %c0_32 = arith.constant 0 : index
      %c0_33 = arith.constant 0 : index
      %58 = vector.load %arg11[%c0_32, %c0_33] : memref<8x1xf32, #tpu.memory_space<vmem>>, vector<8x1xf32>
      %cst_34 = arith.constant dense<0xFF800000> : vector<8xf32>
      %59 = vector.multi_reduction <maximumf>, %44, %cst_34 [1] : vector<8x128xf32> to vector<8xf32>
      %60 = vector.shape_cast %59 : vector<8xf32> to vector<8x1xf32>
      %61 = arith.maximumf %58, %60 : vector<8x1xf32>
      %62 = vector.broadcast %61 : vector<8x1xf32> to vector<8x128xf32>
      %63 = arith.subf %44, %62 : vector<8x128xf32>
      %64 = math.exp %63 : vector<8x128xf32>
      %cst_35 = arith.constant 0.000000e+00 : f32
      %65 = vector.broadcast %cst_35 : f32 to vector<8x128xf32>
      %66 = arith.select %57, %64, %65 : vector<8x128xi1>, vector<8x128xf32>
      %c0_36 = arith.constant 0 : index
      %c0_37 = arith.constant 0 : index
      %67 = vector.load %arg12[%c0_36, %c0_37] : memref<8x1xf32, #tpu.memory_space<vmem>>, vector<8x1xf32>
      %68 = arith.subf %58, %61 : vector<8x1xf32>
      %69 = math.exp %68 : vector<8x1xf32>
      %70 = arith.mulf %67, %69 : vector<8x1xf32>
      %cst_38 = arith.constant dense<0.000000e+00> : vector<8xf32>
      %71 = vector.multi_reduction <add>, %66, %cst_38 [1] : vector<8x128xf32> to vector<8xf32>
      %72 = vector.shape_cast %71 : vector<8xf32> to vector<8x1xf32>
      %73 = arith.addf %70, %72 : vector<8x1xf32>
      %c0_39 = arith.constant 0 : index
      %c0_40 = arith.constant 0 : index
      %74 = vector.load %arg12[%c0_39, %c0_40] : memref<8x1xf32, #tpu.memory_space<vmem>>, vector<8x1xf32>
      tpu.vector_store %arg12[%c0_39, %c0_40], %73 {strides = array<i32>} : memref<8x1xf32, #tpu.memory_space<vmem>>, vector<8x1xf32>,
      %c0_41 = arith.constant 0 : index
      %c0_42 = arith.constant 0 : index
      %75 = vector.load %arg13[%c0_41, %c0_42] : memref<8x1xf32, #tpu.memory_space<vmem>>, vector<8x1xf32>
      %76 = arith.extui %57 : vector<8x128xi1> to vector<8x128xi32>
      %77 = arith.sitofp %76 : vector<8x128xi32> to vector<8x128xf32>
      %cst_43 = arith.constant 1.000000e+00 : f32
      %78 = vector.broadcast %cst_43 : f32 to vector<8x128xf32>
      %79 = arith.subf %78, %77 : vector<8x128xf32>
      %80 = vector.broadcast %18 : vector<1x128xf32> to vector<8x128xf32>
      %81 = arith.mulf %80, %79 : vector<8x128xf32>
      %cst_44 = arith.constant dense<0.000000e+00> : vector<8xf32>
      %82 = vector.multi_reduction <add>, %81, %cst_44 [1] : vector<8x128xf32> to vector<8xf32>
      %83 = vector.shape_cast %82 : vector<8xf32> to vector<8x1xf32>
      %84 = arith.addf %75, %83 : vector<8x1xf32>
      %c0_45 = arith.constant 0 : index
      %c0_46 = arith.constant 0 : index
      %85 = vector.load %arg13[%c0_45, %c0_46] : memref<8x1xf32, #tpu.memory_space<vmem>>, vector<8x1xf32>
      tpu.vector_store %arg13[%c0_45, %c0_46], %84 {strides = array<i32>} : memref<8x1xf32, #tpu.memory_space<vmem>>, vector<8x1xf32>,
      %c0_47 = arith.constant 0 : index
      %c0_48 = arith.constant 0 : index
      %86 = vector.load %arg11[%c0_47, %c0_48] : memref<8x1xf32, #tpu.memory_space<vmem>>, vector<8x1xf32>
      tpu.vector_store %arg11[%c0_47, %c0_48], %61 {strides = array<i32>} : memref<8x1xf32, #tpu.memory_space<vmem>>, vector<8x1xf32>,
    } else {
    }
    %c1_i32_27 = arith.constant 1 : i32
    %48 = arith.cmpi eq, %arg1, %c1_i32_27 : i32
    %49 = arith.extui %48 : i1 to i32
    %c0_i32_28 = arith.constant 0 : i32
    %50 = arith.cmpi ne, %49, %c0_i32_28 : i32
    scf.if %50 {
      %cst_31 = arith.constant 1.960000e+00 : f32
      %56 = vector.broadcast %cst_31 : f32 to vector<8x128xf32>
      %57 = arith.cmpf ole, %27, %56 : vector<8x128xf32>
      %c0_32 = arith.constant 0 : index
      %c0_33 = arith.constant 0 : index
      %58 = vector.load %arg11[%c0_32, %c0_33] : memref<8x1xf32, #tpu.memory_space<vmem>>, vector<8x1xf32>
      %59 = vector.broadcast %58 : vector<8x1xf32> to vector<8x128xf32>
      %60 = arith.subf %44, %59 : vector<8x128xf32>
      %61 = math.exp %60 : vector<8x128xf32>
      %cst_34 = arith.constant 0.000000e+00 : f32
      %62 = vector.broadcast %cst_34 : f32 to vector<8x128xf32>
      %63 = arith.select %57, %61, %62 : vector<8x128xi1>, vector<8x128xf32>
      %cst_35 = arith.constant 1.401300e-45 : f32
      %64 = vector.broadcast %cst_35 : f32 to vector<8x128xf32>
      %65 = arith.maximumf %63, %64 : vector<8x128xf32>
      %c0_36 = arith.constant 0 : index
      %c0_37 = arith.constant 0 : index
      %66 = vector.load %arg12[%c0_36, %c0_37] : memref<8x1xf32, #tpu.memory_space<vmem>>, vector<8x1xf32>
      %c0_38 = arith.constant 0 : index
      %c0_39 = arith.constant 0 : index
      %67 = vector.load %arg13[%c0_38, %c0_39] : memref<8x1xf32, #tpu.memory_space<vmem>>, vector<8x1xf32>
      %cst_40 = arith.constant 1.401300e-45 : f32
      %68 = vector.broadcast %cst_40 : f32 to vector<8x1xf32>
      %69 = arith.mulf %68, %67 : vector<8x1xf32>
      %70 = arith.addf %66, %69 : vector<8x1xf32>
      %71 = arith.mulf %16, %65 : vector<8x128xf32>
      %72 = vector.broadcast %3 : f32 to vector<8x1xf32>
      %73 = arith.divf %72, %70 : vector<8x1xf32>
      %74 = vector.broadcast %73 : vector<8x1xf32> to vector<8x128xf32>
      %75 = arith.mulf %71, %74 : vector<8x128xf32>
      %cst_41 = arith.constant 0.000000e+00 : f32
      %76 = vector.broadcast %cst_41 : f32 to vector<1x128xf32>
      %77 = arith.cmpf ogt, %18, %76 : vector<1x128xf32>
      %cst_42 = arith.constant -1.000000e+30 : f32
      %78 = vector.shape_cast %77 : vector<1x128xi1> to vector<1x128xi1>
      %79 = vector.broadcast %78 : vector<1x128xi1> to vector<8x128xi1>
      %80 = vector.broadcast %cst_42 : f32 to vector<8x128xf32>
      %81 = arith.select %79, %75, %80 : vector<8x128xi1>, vector<8x128xf32>
      %c0_43 = arith.constant 0 : index
      %c0_44 = arith.constant 0 : index
      %82 = vector.load %arg14[%c0_43, %c0_44] : memref<8x1xf32, #tpu.memory_space<vmem>>, vector<8x1xf32>
      %cst_45 = arith.constant dense<0xFF800000> : vector<8xf32>
      %83 = vector.multi_reduction <maximumf>, %81, %cst_45 [1] : vector<8x128xf32> to vector<8xf32>
      %84 = vector.shape_cast %83 : vector<8xf32> to vector<8x1xf32>
      %85 = arith.maximumf %82, %84 : vector<8x1xf32>
      %c0_46 = arith.constant 0 : index
      %c0_47 = arith.constant 0 : index
      %86 = vector.load %arg15[%c0_46, %c0_47] : memref<8x1xf32, #tpu.memory_space<vmem>>, vector<8x1xf32>
      %87 = arith.subf %82, %85 : vector<8x1xf32>
      %88 = math.exp %87 : vector<8x1xf32>
      %89 = arith.mulf %86, %88 : vector<8x1xf32>
      %90 = vector.broadcast %85 : vector<8x1xf32> to vector<8x128xf32>
      %91 = arith.subf %81, %90 : vector<8x128xf32>
      %92 = math.exp %91 : vector<8x128xf32>
      %cst_48 = arith.constant dense<0.000000e+00> : vector<8xf32>
      %93 = vector.multi_reduction <add>, %92, %cst_48 [1] : vector<8x128xf32> to vector<8xf32>
      %94 = vector.shape_cast %93 : vector<8xf32> to vector<8x1xf32>
      %95 = arith.addf %89, %94 : vector<8x1xf32>
      %c0_49 = arith.constant 0 : index
      %c0_50 = arith.constant 0 : index
      %96 = vector.load %arg15[%c0_49, %c0_50] : memref<8x1xf32, #tpu.memory_space<vmem>>, vector<8x1xf32>
      tpu.vector_store %arg15[%c0_49, %c0_50], %95 {strides = array<i32>} : memref<8x1xf32, #tpu.memory_space<vmem>>, vector<8x1xf32>,
      %c0_51 = arith.constant 0 : index
      %c0_52 = arith.constant 0 : index
      %97 = vector.load %arg14[%c0_51, %c0_52] : memref<8x1xf32, #tpu.memory_space<vmem>>, vector<8x1xf32>
      tpu.vector_store %arg14[%c0_51, %c0_52], %85 {strides = array<i32>} : memref<8x1xf32, #tpu.memory_space<vmem>>, vector<8x1xf32>,
    } else {
    }
    %c1_i32_29 = arith.constant 1 : i32
    %51 = arith.cmpi eq, %arg1, %c1_i32_29 : i32
    %c3_i32 = arith.constant 3 : i32
    %52 = arith.cmpi eq, %arg2, %c3_i32 : i32
    %53 = arith.andi %51, %52 : i1
    %54 = arith.extui %53 : i1 to i32
    %c0_i32_30 = arith.constant 0 : i32
    %55 = arith.cmpi ne, %54, %c0_i32_30 : i32
    scf.if %55 {
      %c0_31 = arith.constant 0 : index
      %c0_32 = arith.constant 0 : index
      %56 = vector.load %arg14[%c0_31, %c0_32] : memref<8x1xf32, #tpu.memory_space<vmem>>, vector<8x1xf32>
      %c0_33 = arith.constant 0 : index
      %c0_34 = arith.constant 0 : index
      %57 = vector.load %arg15[%c0_33, %c0_34] : memref<8x1xf32, #tpu.memory_space<vmem>>, vector<8x1xf32>
      %58 = math.log %57 : vector<8x1xf32>
      %59 = arith.addf %56, %58 : vector<8x1xf32>
      %c0_35 = arith.constant 0 : index
      %c0_36 = arith.constant 0 : index
      %60 = vector.load %arg10[%c0_35, %c0_36] : memref<8x1xf32, #tpu.memory_space<vmem>>, vector<8x1xf32>
      %61 = arith.subf %59, %60 : vector<8x1xf32>
      %62 = vector.shape_cast %61 : vector<8x1xf32> to vector<8x1xf32>
      %63 = vector.broadcast %62 : vector<8x1xf32> to vector<8x128xf32>
      %c0_37 = arith.constant 0 : index
      %c0_38 = arith.constant 0 : index
      %64 = vector.load %arg8[%c0_37, %c0_38] : memref<8x128xf32, #tpu.memory_space<vmem>>, vector<8x128xf32>
      tpu.vector_store %arg8[%c0_37, %c0_38], %63 {strides = array<i32>} : memref<8x128xf32, #tpu.memory_space<vmem>>, vector<8x128xf32>,
    } else {
    }
    return
  }
  func.func @transform_0(%arg0: i32, %arg1: i32, %arg2: i32) -> (i32, i32) {
    %c0_i32 = arith.constant 0 : i32
    %c0_i32_0 = arith.constant 0 : i32
    return %arg0, %c0_i32 : i32, i32
  }
  func.func @transform_1(%arg0: i32, %arg1: i32, %arg2: i32) -> (i32, i32) {
    %c0_i32 = arith.constant 0 : i32
    %c0_i32_0 = arith.constant 0 : i32
    return %arg0, %c0_i32 : i32, i32
  }
  func.func @transform_2(%arg0: i32, %arg1: i32, %arg2: i32) -> (i32, i32) {
    %c0_i32 = arith.constant 0 : i32
    %c0_i32_0 = arith.constant 0 : i32
    return %c0_i32, %arg2 : i32, i32
  }
  func.func @transform_3(%arg0: i32, %arg1: i32, %arg2: i32) -> (i32, i32) {
    %c0_i32 = arith.constant 0 : i32
    %c0_i32_0 = arith.constant 0 : i32
    return %c0_i32, %arg2 : i32, i32
  }
  func.func @transform_4(%arg0: i32, %arg1: i32, %arg2: i32) -> (i32, i32) {
    %c0_i32 = arith.constant 0 : i32
    %c0_i32_0 = arith.constant 0 : i32
    %c0_i32_1 = arith.constant 0 : i32
    return %c0_i32, %c0_i32_0 : i32, i32
  }
  func.func @transform_5(%arg0: i32, %arg1: i32, %arg2: i32) -> (i32, i32) {
    %c0_i32 = arith.constant 0 : i32
    %c0_i32_0 = arith.constant 0 : i32
    return %arg0, %c0_i32 : i32, i32
  }
}

</mosaic_0001>

<bundles_post_ra>
// kernel: tpu_custom_call.1
= control target key start
LH: loop header
LB: loop body
LE: loop exit
PB: predicated region body
PF: predicated region fallthrough
CT: control target
= control target key end

     0   :  { %s1706_s0 = inlined_call_operand.hbm [shape: bf16[16,32], index: 0, kind: input, shape index: {}]   ;;  %s1707_s1 = inlined_call_operand.hbm [shape: bf16[16,32], index: 1, kind: input, shape index: {}]   ;;  %s1708_s2 = inlined_call_operand.hbm [shape: bf16[32,512], index: 2, kind: input, shape index: {}]   ;;  %s1709_s3 = inlined_call_operand.hbm [shape: f32[2,512], index: 3, kind: input, shape index: {}]   ;;  %s1710_s4 = inlined_call_operand.<no memory space> [shape: f32[1,1], index: 4, kind: input, shape index: {}]   ;;  %s1711_s5 = inlined_call_operand.hbm [shape: f32[16,128], index: 5, kind: output, shape index: {}]  }
   0x1   :  { %1726 = sst [smem:[#allocation36_spill]] %s1706_s0 }
   0x2   :  { %1727 = sst [smem:[#allocation37_spill]] %s1707_s1 }
   0x3   :  { %1728 = sst [smem:[#allocation38_spill]] %s1708_s2 }
   0x4   :  { %1729 = sst [smem:[#allocation39_spill]] %s1711_s5 }
   0x5   :  { %10 = sst [smem:[#allocation9]] %s1710_s4 }
   0x6   :  { %11 = vsyncpa [#allocation11], 0 }
   0x7   :  { %13 = vsyncpa [#allocation11 + $0x1], 0 }
   0x8   :  { %14 = vsyncpa [#allocation14], 0 }
   0x9   :  { %16 = vsyncpa [#allocation14 + $0x1], 0 }
   0xa   :  { %17 = vsyncpa [#allocation17], 0 }
   0xb   :  { %19 = vsyncpa [#allocation17 + $0x1], 0 }
   0xc   :  { %20 = vsyncpa [#allocation12], 0 }
   0xd   :  { %22 = vsyncpa [#allocation12 + $0x1], 0  ;;  %s1323_s20 = smov 0   ;;  %s1325_s21 = smov 0  }
   0xe   :  { %s1327_s22 = smov 0   ;;  %s1329_s23 = smov 0  }
   0xf   :  { %s1331_s24 = smov 0   ;;  %s1333_s25 = smov 0  }
  0x10   :  { %s1335_s4 = smov 0   ;;  %s1337_s26 = smov 0  }
  0x11   :  { %s1339_s27 = smov 0   ;;  %s1341_s28 = smov 0  }
  0x12   :  { %s1343_s29 = smov 0   ;;  %s1345_s30 = smov 0  }
  0x13   :  { %s1347_s6 = smov 0  }
  0x14 LB: > { %1730 = sst [smem:[#allocation24_spill]] %s1232_s23  ;;  %s1389_s7 = sadd.s32 4294967295, %s1268_s6   ;;  %s1268_s6 = sphi %s1347_s6, %s28_s6   ;;  %s1264_s30 = sphi %s1345_s30, %s1771_s30   ;;  %s1260_s29 = sphi %s1343_s29, %s1770_s29   ;;  %s1256_s28 = sphi %s1341_s28, %s1780_s28   ;;  %s1252_s27 = sphi %s1339_s27, %s1768_s27   ;;  %s1248_s26 = sphi %s1337_s26, %s1779_s26   ;;  %s1244_s4 = sphi %s1335_s4, %s1778_s4   ;;  %s1240_s25 = sphi %s1333_s25, %s1777_s25   ;;  %s1236_s24 = sphi %s1331_s24, %s1776_s24   ;;  %s1232_s23 = sphi %s1329_s23, %s1775_s23   ;;  %s1228_s22 = sphi %s1327_s22, %s1774_s22   ;;  %s1224_s21 = sphi %s1325_s21, %s1773_s21   ;;  %s1220_s20 = sphi %s1323_s20, %s1772_s20  }
  0x15   : > { %1731 = sst [smem:[#allocation25_spill]] %s1252_s27  ;;  %s790_s8 = sadd.s32 4294967294, %s1268_s6  }
  0x16   : > { %1732 = sst [smem:[#allocation26_spill]] %s1260_s29  ;;  %s40_s9 = sadd.s32 1, %s1256_s28 }
  0x17   : > { %1733 = sst [smem:[#allocation27_spill]] %s1264_s30  ;;  %s43_s10 = sadd.s32 1, %s1260_s29 }
  0x18   : > { %1734 = sst [smem:[#allocation28_spill]] %s1268_s6  ;;  %p41_p0 = scmp.ge.s32.totalorder %s40_s9, 4 }
  0x19   : > { %s47_s11 = sadd.s32 1, %s1264_s30  ;;  %s54_s12 = sadd.s32 1, %s1240_s25 }
  0x1a   : > { %p61_p1 = scmp.ne.s32.totalorder %s1240_s25, %s1236_s24  ;;  %s1782_s9 = smov (%p41_p0, %s40_s9), 0 }
  0x1b   : > { %1735 = sst [smem:[#allocation29_spill]] %s1782_s9  ;;  %s1784_s10 = smov (!%p41_p0, %s43_s10), %s1260_s29 }
  0x1c   : > { %p62_p2 = scmp.eq.s32.totalorder %s1268_s6, 0  ;;  %p1712_p3 = scmp.ne.s32.totalorder %s1236_s24, %s1232_s23 }
  0x1d   : > { %p45_p4 = scmp.ge.s32.totalorder %s1784_s10, 2  ;;  %p68_p5 = scmp.eq.s32.totalorder %s1389_s7, 0 }
  0x1e   : > { %p1410_p6 = por %p62_p2, %p61_p1  ;;  %s103_s14 = ssub.s32 %s1256_s28, %s1782_s9 }
  0x1f   : > { %s1786_s10 = smov (%p45_p4, %s1784_s10), 0  ;;  %s1788_s11 = smov (!%p45_p4, %s47_s11), %s1264_s30 }
  0x20   : > { %1737 = sst [smem:[#allocation30_spill]] %s1786_s10  ;;  %p1424_p7 = por %p68_p5, %p1712_p3 }
  0x21   : > { %p104_p8 = scmp.eq.s32.totalorder %s103_s14, 0  ;;  %p49_p9 = scmp.ge.s32.totalorder %s1788_s11, 2 }
  0x22   : > { %s106_s16 = sadd.s32 1, %s1228_s22  ;;  %p113_p10 = scmp.ne.s32.totalorder %s1228_s22, %s1224_s21 }
  0x23   : > { %s1430_s17 = scalar_select %p104_p8, %s1228_s22, %s106_s16  }
  0x24   : > { %s1790_s11 = smov (%p49_p9, %s1788_s11), 0  ;;  %p119_p11 = scmp.ne.s32.totalorder %s1224_s21, %s1220_s20 }
  0x25   : > { %1739 = sst [smem:[#allocation31_spill]] %s1430_s17  ;;  %s51_s18 = ssub.s32 %s1264_s30, %s1790_s11 }
  0x26   : > { %1740 = sst [smem:[#allocation32_spill]] %s1790_s11  ;;  %p190_p12 = scmp.eq.s32.totalorder %s1389_s7, 15 }
  0x27   : > { %p52_p13 = scmp.eq.s32.totalorder %s51_s18, 0  ;;  %p1443_p0 = por %p113_p10, %p62_p2 }
  0x28   : > { %p1449_p4 = por %p119_p11, %p68_p5  ;;  %p1456_p8 = por %p190_p12, %p61_p1 }
  0x29   : > { %s1461_s20 = scalar_select %p52_p13, %s1240_s25, %s54_s12  }
  0x2a   : > { %s1743_s16 = scalar_select %p1456_p8, 1, 0 }
  0x2b   : > { %1745 = sst [smem:[#allocation34_spill]] %s1461_s20  ;;  %p196_p9 = scmp.eq.s32.totalorder %s790_s8, 15 }
  0x2c   : > { %1744 = sst [smem:[#allocation33_spill]] %s1743_s16  ;;  %p858_p3 = scmp.lt.s32.totalorder %s1268_s6, 16 }
  0x2d   : > { %s1718_s18 = sand.u32 1, %s1240_s25   ;;  %p1746_p2 = scmp.ne.s32.totalorder %s1236_s24, %s1232_s23 }
  0x2e   : > { %s1476_s10 = sshll.u32 %s1718_s18, 2  ;;  %s794_s9 = sshll.u32 %s1264_s30, 6 }
  0x2f   : > { %p1470_p10 = por %p196_p9, %p1746_p2  ;;  %p1481_p1 = pnand %p858_p3, %p1410_p6 }
  0x30   : > { %s237_s8 = sand.u32 1, %s1268_s6   ;;  %s1750_s1 = sld [smem:[#allocation37_spill]] }
  0x31   : > { %s1747_s11 = scalar_select %p1470_p10, 1, 0 }
  0x32   : > { %s241_s23 = scalar_lea.vmem [#allocation13], %s1476_s10  ;;  %p1492_p5 = pnand %p858_p3, %p1443_p0 }
  0x33   : > { %1748 = sst [smem:[#allocation35_spill]] %s1747_s11  ;;  %s248_s5 = sshll.u32 %s241_s23, 4  ;;  %s249_s5 = int_to_ptr.vmem [resolvable:$true] %s248_s5 }
  0x34   : > { %s1496_s13 = scalar_lea.sflag [#allocation14], %s237_s8  ;;  %p1720_p6 = pneg %p1481_p1 }
  0x35   : > { %s1021_s30 = scalar_lea.vmem %s249_s5, 64  ;;  %s1270_s20 = smov [#allocation13]  }
  0x36   : > { %s246_s17 = scalar_lea.hbm %s1750_s1, %s794_s9  ;;  %p1022_p11 = scmp.ne.s32.totalorder %s249_s5, %s1021_s30 }
  0x37   : > { %s1026_s12 = sshll.u32 %s1270_s20, 4  ;;  %s1027_s12 = int_to_ptr.vmem [resolvable:$false] %s1026_s12 }
  0x38   : > { %p1024_p12 = pnand %p1022_p11, %p1720_p6  ;;  %s1028_s23 = scalar_lea.vmem %s1027_s12, 128 }
  0x39   : > { %p1029_p9 = scmp.lt.s32.totalorder %s249_s5, %s1027_s12  ;;  %p1030_p2 = scmp.lt.s32.totalorder %s1028_s23, %s1021_s30 }
  0x3a   : > { %p1025_p13 = pneg %p1024_p12 }
  0x3b   : > { %p1031_p3 = por %p1030_p2, %p1029_p9 }
  0x3d   : > { %p1032_p0 = pnand %p1031_p3, %p1025_p13 }
  0x3f   : > { %1035 = shalt.err (!%p1032_p0)
}
  0x40   : > { %847 = dma.hbm_to_vmem [thread:$0]  (!%p1481_p1), %s246_s17, 64, %s249_s5, %s1496_s13  }
  0x41   : > { %p801_p11 = scmp.ge.s32.totalorder %s1268_s6, 1  ;;  %p291_p12 = scmp.lt.s32.totalorder %s1268_s6, 17 }
  0x42   : > { %s1753_s0 = sld [smem:[#allocation36_spill]]  ;;  %s223_s12 = scalar_lea.vmem [#allocation10], %s1476_s10 }
  0x43   : > { %p1508_p6 = pnand %p801_p11, %p291_p12  ;;  %s230_s23 = sshll.u32 %s223_s12, 4  ;;  %s231_s23 = int_to_ptr.vmem [resolvable:$true] %s230_s23 }
  0x44   : > { %s1517_s1 = sand.u32 1, %s1228_s22   ;;  %s1754_s11 = sand.u32 1, %s1240_s25  }
  0x45   : > { %s220_s16 = scalar_lea.sflag [#allocation11], %s1754_s11  ;;  %s1049_s27 = scalar_lea.vmem %s231_s23, 64 }
  0x46   : > { %p1050_p13 = scmp.ne.s32.totalorder %s231_s23, %s1049_s27  ;;  %p1755_p9 = pneg %p1481_p1 }
  0x47   : > { %s1271_s5 = smov [#allocation10]  }
  0x48   : > { %s228_s20 = scalar_lea.hbm %s1753_s0, %s794_s9  ;;  %p1052_p2 = pnand %p1050_p13, %p1755_p9 }
  0x49   : > { %s1054_s17 = sshll.u32 %s1271_s5, 4  ;;  %s1055_s17 = int_to_ptr.vmem [resolvable:$false] %s1054_s17 }
  0x4a   : > { %p1053_p3 = pneg %p1052_p2  ;;  %s1056_s6 = scalar_lea.vmem %s1055_s17, 128 }
  0x4b   : > { %p1057_p0 = scmp.lt.s32.totalorder %s231_s23, %s1055_s17  ;;  %p1058_p11 = scmp.lt.s32.totalorder %s1056_s6, %s1049_s27 }
  0x4d   : > { %p1059_p12 = por %p1058_p11, %p1057_p0 }
  0x4f   : > { %p1060_p10 = pnand %p1059_p12, %p1053_p3 }
  0x51   : > { %1063 = shalt.err (!%p1060_p10)
}
  0x52   : > { %844 = dma.hbm_to_vmem [thread:$0]  (!%p1481_p1), %s228_s20, 64, %s231_s23, %s220_s16  }
  0x53   : > { %s797_s9 = sshll.u32 %s1517_s1, 4  ;;  %s798_s10 = sshll.u32 %s1256_s28, 6 }
  0x54   : > { %s1756_s2 = sld [smem:[#allocation38_spill]]  ;;  %s259_s12 = scalar_lea.vmem [#allocation15], %s797_s9 }
  0x55   : > { %s265_s5 = sshll.u32 %s259_s12, 4  ;;  %p1066_p13 = pneg %p1492_p5  ;;  %s266_s5 = int_to_ptr.vmem [resolvable:$true] %s265_s5 }
  0x56   : > { %s1077_s27 = scalar_lea.vmem %s266_s5, 256  ;;  %s1272_s29 = smov [#allocation15]  }
  0x57   : > { %p1078_p10 = scmp.ne.s32.totalorder %s266_s5, %s1077_s27  ;;  %s1082_s6 = sshll.u32 %s1272_s29, 4  ;;  %s1083_s6 = int_to_ptr.vmem [resolvable:$false] %s1082_s6 }
  0x58   : > { %s1084_s16 = scalar_lea.vmem %s1083_s6, 512  ;;  %p1085_p1 = scmp.lt.s32.totalorder %s266_s5, %s1083_s6 }
  0x59   : > { %p1080_p9 = pnand %p1078_p10, %p1066_p13  ;;  %p1086_p3 = scmp.lt.s32.totalorder %s1084_s16, %s1077_s27 }
  0x5a   : > { %s264_s8 = scalar_lea.hbm %s1756_s2, %s798_s10 }
  0x5b   : > { %p1081_p2 = pneg %p1080_p9  ;;  %p1087_p0 = por %p1086_p3, %p1085_p1 }
  0x5d   : > { %p1088_p11 = pnand %p1087_p0, %p1081_p2 }
  0x5f   : > { %1091 = shalt.err (!%p1088_p11)
}
  0x60   : > { %s1273_s20 = smov 256   ;;  %s1274_s23 = smov 64  }
  0x61   : > { %s1275_s17 = smov 4   ;;  %s799_s9 = sshll.u32 %s1517_s1, 1 }
  0x62   : > { %850 = dma.hbm_to_vmem [thread:$0]  (!%p1492_p5), %s264_s8, 256, %s266_s5, %s1496_s13, %s1273_s20, %s1274_s23, %s1275_s17  }
  0x63   : > { %s800_s10 = sshll.u32 %s1256_s28, 5  ;;  %s279_s27 = scalar_lea.vmem [#allocation16], %s799_s9 }
  0x64   : > { %s284_s12 = scalar_lea.hbm %s1709_s3, %s800_s10  ;;  %s286_s29 = sshll.u32 %s279_s27, 4  ;;  %s287_s29 = int_to_ptr.vmem [resolvable:$true] %s286_s29 }
  0x65   : > { %s276_s6 = scalar_lea.sflag [#allocation17], %s1517_s1  ;;  %s1105_s16 = scalar_lea.vmem %s287_s29, 32 }
  0x66   : > { %p1106_p12 = scmp.ne.s32.totalorder %s287_s29, %s1105_s16  ;;  %s1276_s0 = smov [#allocation16]  }
  0x67   : > { %s1110_s2 = sshll.u32 %s1276_s0, 4  ;;  %s1111_s2 = int_to_ptr.vmem [resolvable:$false] %s1110_s2 }
  0x68   : > { %p1108_p10 = pnand %p1106_p12, %p1066_p13  ;;  %s1112_s13 = scalar_lea.vmem %s1111_s2, 64 }
  0x69   : > { %p1113_p2 = scmp.lt.s32.totalorder %s287_s29, %s1111_s2  ;;  %p1114_p1 = scmp.lt.s32.totalorder %s1112_s13, %s1105_s16 }
  0x6a   : > { %p1109_p9 = pneg %p1108_p10 }
  0x6b   : > { %p1115_p3 = por %p1114_p1, %p1113_p2 }
  0x6d   : > { %p1116_p0 = pnand %p1115_p3, %p1109_p9 }
  0x6f   : > { %1119 = shalt.err (!%p1116_p0)
}
  0x70   : > { %853 = dma.hbm_to_vmem [thread:$0]  (!%p1492_p5), %s284_s12, 32, %s287_s29, %s276_s6  }
  0x71   : > { %295 = sbr.rel (%p1508_p6) target bundleno = 1800 (0x708), region = 40  ;;  %s1553_s1 = sand.u32 (!%p1508_p6), 1, %s1236_s24  }
  0x72   : > { %s802_s0 = sshll.u32 (!%p1508_p6), %s1553_s1, 2  ;;  %s298_s8 = scalar_lea.sflag (!%p1508_p6), [#allocation11], %s1553_s1 }
  0x73   : > { %s1557_s5 = scalar_lea.vmem (!%p1508_p6), [#allocation10], %s802_s0 }
  0x76   : > { %1199 = dma.done.wait (%p1424_p7), %s298_s8, 64  }
  0x77   : > { %1201 = vsyncadd (%p1424_p7), %s298_s8, 4294967232  ;;  %s306_s2 = sand.u32 1, %s1389_s7   ;;  %s1564_s19 = scalar_lea.vmem [#allocation13], %s802_s0 }
  0x78   : > { %s307_s18 = scalar_lea.sflag [#allocation14], %s306_s2 }
  0x79   : > { %1203 = dma.done.wait (%p1424_p7), %s307_s18, 64  }
  0x7a   : > { %1205 = vsyncadd (%p1424_p7), %s307_s18, 4294967232  ;;  %s317_s20 = sand.u32 1, %s1224_s21  }
  0x7b   : > { %s804_s23 = sshll.u32 %s317_s20, 4 }
  0x7c   : > { %s1571_s17 = scalar_lea.vmem [#allocation15], %s804_s23 }
  0x7d   : > { %1207 = dma.done.wait (%p1449_p4), %s307_s18, 256  }
  0x7e   : > { %1209 = vsyncadd (%p1449_p4), %s307_s18, 4294967040  ;;  %s805_s7 = sshll.u32 %s317_s20, 1  ;;  %s325_s9 = scalar_lea.sflag [#allocation17], %s317_s20 }
  0x7f   : > { %s1577_s10 = scalar_lea.vmem [#allocation16], %s805_s7 }
  0x80   : > { %1211 = dma.done.wait (%p1449_p4), %s325_s9, 32  }
  0x81   : > { %1213 = vsyncadd (%p1449_p4), %s325_s9, 4294967264  ;;  %s806_s15 = sshll.u32 %s1553_s1, 3  ;;  %s371_s11 = sld [smem:[#allocation9]] }
  0x82   : > { %p377_p7 = scmp.eq.s32.totalorder %s1248_s26, 0  ;;  %p378_p5 = scmp.eq.s32.totalorder %s1244_s4, 0 }
  0x83   : > { %s1277_s30 = smov 1e-08   ;;  %s1278_s27 = smov 10000.0  }
  0x84   : > { %p379_p6 = pnand %p378_p5, %p377_p7  ;;  %s1590_s6 = scalar_lea.vmem [#allocation18], %s806_s15 }
  0x87   : > { %s372_s12 = smax.f32 %s1277_s30, %s371_s11 }
  0x88   : > { %s373_s29 = smin.f32 %s1278_s27, %s372_s12 }
  0x89   : > { %v374_v0 = vstv %s373_s29 }
  0x8a   : > { %979 = vrcp.f32 %v374_v0 }
  0x97   : > { %v980_v1 = vpop.eup %979 }
  0x98   : > { %829 = vpush %v980_v1 }
  0xc5   : > { %382 = sbr.rel (%p379_p6) target bundleno = 365 (0x16d), region = 60 }
  0xc9   : > { %s1588_s14 = spop %829 }
  0xca   : > { %v383_v2 = vld [vmem:[%s1557_s5] sm:$0xf]  ;;  %v385_v3 = vld [vmem:[%s1564_s19] sm:$0xf]  ;;  %vm395_vm0 = vcmask 7168   ;;  %vm388_vm1 = vcmask 261120   ;;  %v401_v14 = vstv %s1588_s14 }
  0xcb   : > { %v384_v4 = vunpack.c.l.bf16 %v383_v2  ;;  %v386_v5 = vunpack.c.l.bf16 %v385_v3  ;;  %v1279_v6 = vmov -1e+30   ;;  %v1280_v7 = vmov 0.0  }
  0xcc   : > { %404 = vst.msk [vmem:[#allocation4] sm:$0xff] %vm395_vm0, %v1279_v6  ;;  %405 = vst.msk [vmem:[#allocation5] sm:$0xff] %vm395_vm0, %v1280_v7 }
  0xcd   : > { %406 = vst.msk [vmem:[#allocation6] sm:$0xff] %vm395_vm0, %v1280_v7  ;;  %v387_v8 = vmul.f32 %v384_v4, %v384_v4  ;;  %v397_v9 = vmul.f32 %v386_v5, %v384_v4 }
  0xcf   : > { %v389_v10 = vsel %vm388_vm1, %v387_v8, 0.0  ;;  %v398_v11 = vsel %vm388_vm1, %v397_v9, 0.0 }
  0xd0   : > { %390 = vadd.xlane.f32.xlu0 %v389_v10 }
  0xd4   : > { %399 = vadd.xlane.f32.xlu0 %v398_v11 }
 0x159   : > { %v391_v12 = vpop.xlane.xlu0 %390 }
 0x15a   : > { %v392_v13 = vmax.f32 %v391_v12, 1e-08 }
 0x15c   : > { %981 = vrcp.f32 %v392_v13 }
 0x15d   : > { %v400_v15 = vpop.xlane.xlu0 %399 }
 0x15e   : > { %v402_v16 = vmul.f32 %v401_v14, %v400_v15 }
 0x160   : > { %403 = vst.msk [vmem:[#allocation3] sm:$0xff] %vm395_vm0, %v402_v16 }
 0x169   : > { %v982_v17 = vpop.eup %981 }
 0x16a   : > { %v394_v18 = vmul.f32 %v982_v17, %v391_v12 }
 0x16c   : > { %396 = vst.msk [vmem:[#allocation2] sm:$0xff] %vm395_vm0, %v394_v18 }
 0x16d PF: > { %p407_p4 = scmp.eq.s32.totalorder %s1248_s26, 1 }
 0x16f   : > { %p408_p13 = pnand %p407_p4, %p378_p5 }
 0x171   : > { %411 = sbr.rel (%p408_p13) target bundleno = 376 (0x178), region = 64 }
 0x176   : > { %v412_v19 = vld [vmem:[#allocation3] sm:$0xff]  ;;  %vm413_vm2 = vcmask 7168   ;;  %v1281_v20 = vmov 1.0  }
 0x177   : > { %414 = vst.msk [vmem:[#allocation7] sm:$0xff] %vm413_vm2, %v412_v19  ;;  %415 = vst.msk [vmem:[#allocation8] sm:$0xff] %vm413_vm2, %v1281_v20 }
 0x178 PF: > { %v984_v21 = vld [vmem:[%s1571_s17 + $0x8] sm:$0xff]   ;;  %v1282_v22 = vmov 0.0   ;;  %v985_v23 = vld [vmem:[%s1571_s17] sm:$0xff]   ;;  %vm1283_vm3 = vmmov 0   ;;  %v1284_v25 = vmov 0   ;;  %vm433_vm4 = vcmask 261120  }
 0x179   : > { %821 = vmatprep.subr.bf16.mxu0 %v1282_v22  ;;  %825 = vmatprep.mubr.msk.bf16.mxu0 %vm1283_vm3, %v1282_v22  ;;  %v479_v24 = vld [vmem:[#allocation2] sm:$0xff]  ;;  %v416_v26 = vld [vmem:[%s1557_s5] sm:$0xf]  ;;  %v810_v30 = vld [vmem:[%s1577_s10] ss:$0 sm:$0xff]  ;;  %v504_v39 = vlaneseq  ;;  %p811_p11 = scmp.ne.s32.totalorder %s1248_s26, 0 }
 0x17a   : > { %822 = vmatpush3.bf16.msra.mxu0 %v984_v21  ;;  %983 = vset.pattern.permute.xlu0 %v1284_v25  ;;  %v478_v40 = vld [vmem:[%s1577_s10 + $0x1] sm:$0x1] }
 0x17b   : > { %823 = vmatprep.subr.bf16.mxu0 %v1282_v22  ;;  %483 = vperm.xlu0 %983, %v479_v24   ;;  %v505_v41 = vshrl.u32 %v504_v39, 7  ;;  %vm502_vm5 = vcmp.gt.f32.partialorder %v478_v40, 0.0 }
 0x17c   : > { %v503_v44 = vsel %vm502_vm5, 1, %v1284_v25 }
 0x17d   : > { %v506_v43 = vsub.s32 0, %v505_v41 }
 0x17e   : > { %824 = vmatpush3.bf16.msra.mxu0 %v985_v23 }
 0x17f   : > { %v1617_v47 = vrot.slane %v503_v44, %v506_v43 }
 0x181   : > { %826 = vmatmul.mubr.msk.bf16.vlgmr.msra.gmra.mxu0 %vm433_vm4, %v416_v26  ;;  %vm508_vm6 = vcmp.eq.s32.totalorder %v1617_v47, 1 }
 0x1f6   : > { %v484_v28 = vpop.permute.xlu0 %483 }
 0x241   : > { %v1608_v27 = vpop.f32.mrf.mxu0 }
 0x242   : > { %v480_v29 = vmul.f32 -2.0, %v1608_v27 }
 0x243   : > { %v827_v31 = vpop.f32.mrf.mxu0 }
 0x244   : > { %v486_v32 = vadd.f32 %v484_v28, %v480_v29 }
 0x245   : > { %v474_v33 = vpop.f32.mrf.mxu0 }
 0x246   : > { %v491_v34 = vadd.f32 %v810_v30, %v486_v32 }
 0x247   : > { %v828_v35 = vpop.f32.mrf.mxu0 }
 0x248   : > { %v1612_v36 = vmax.f32 %v491_v34, 0.25 }
 0x24a   : > { %986 = vlog2.f32 %v1612_v36  ;;  %v496_v37 = vmul.f32 0.25, %v1612_v36 }
 0x24c   : > { %v497_v38 = vsub.f32 1.0, %v496_v37 }
 0x24e   : > { %988 = vlog2.f32 %v497_v38 }
 0x257   : > { %v987_v42 = vpop.eup %986 }
 0x258   : > { %v494_v45 = vmul.f32 0.6931472, %v987_v42 }
 0x25a   : > { %v495_v49 = vmul.f32 -15.0, %v494_v45 }
 0x25b   : > { %v989_v46 = vpop.eup %988 }
 0x25c   : > { %v499_v48 = vmul.f32 0.6931472, %v989_v46 }
 0x25e   : > { %v500_v50 = vmul.f32 14.5, %v499_v48  ;;  %512 = sbr.rel (%p811_p11) target bundleno = 1039 (0x40f), region = 68 }
 0x260   : > { %v501_v51 = vsub.f32 %v495_v49, %v500_v50 }
 0x262   : > { %v509_v52 = vsel %vm508_vm6, %v501_v51, -1e+30 }
 0x263   : > { %515 = vmax.xlane.f32.xlu0 %v509_v52  ;;  %v1285_v53 = vmov 0   ;;  %v514_v54 = vld [vmem:[#allocation4] sm:$0xff]  ;;  %vm535_vm7 = vcmask 7168   ;;  %vm513_vm8 = vcmp.le.f32.partialorder %v1612_v36, 1.96  ;;  %v1286_v61 = vmov 0.0  }
 0x264   : > { %990 = vset.pattern.permute.xlu0 %v1285_v53  ;;  %v812_v62 = vsel %vm513_vm8, 1.0, %v1286_v61  ;;  %v544_v0 = vrot.slane %v478_v40, %v506_v43  ;;  %v527_v6 = vld [vmem:[#allocation5] sm:$0xff]  ;;  %v537_v10 = vld [vmem:[#allocation6] sm:$0xff] }
 0x265   : > { %v540_v63 = vsub.f32 1.0, %v812_v62 }
 0x267   : > { %v545_v3 = vmul.f32 %v544_v0, %v540_v63 }
 0x2ec   : > { %v516_v55 = vpop.xlane.xlu0 %515 }
 0x2ed   : > { %v517_v56 = vmax.f32 %v514_v54, %v516_v55 }
 0x2ef   : > { %v528_v57 = vsub.f32 %v514_v54, %v517_v56  ;;  %550 = vst.msk [vmem:[#allocation4] sm:$0xff] %vm535_vm7, %v517_v56  ;;  %520 = vperm.xlu0 %990, %v517_v56  }
 0x2f1   : > { %v529_v4 = vmul.f32 1.442695, %v528_v57 }
 0x36a   : > { %v521_v58 = vpop.permute.xlu0 %520 }
 0x36b   : > { %v523_v59 = vsub.f32 %v509_v52, %v521_v58 }
 0x36d   : > { %v524_v60 = vmul.f32 1.442695, %v523_v59 }
 0x36f   : > { %991 = vpow2.f32 %v524_v60 }
 0x370   : > { %993 = vpow2.f32 %v529_v4 }
 0x37c   : > { %v992_v1 = vpop.eup %991 }
 0x37d   : > { %v526_v2 = vsel %vm513_vm8, %v992_v1, 0.0  ;;  %v994_v5 = vpop.eup %993 }
 0x37e   : > { %532 = vadd.xlane.f32.xlu1 %v526_v2  ;;  %v531_v7 = vmul.f32 %v994_v5, %v527_v6 }
 0x382   : > { %546 = vadd.xlane.f32.xlu1 %v545_v3 }
 0x407   : > { %v533_v8 = vpop.xlane.xlu1 %532 }
 0x408   : > { %v534_v9 = vadd.f32 %v533_v8, %v531_v7 }
 0x40a   : > { %536 = vst.msk [vmem:[#allocation5] sm:$0xff] %vm535_vm7, %v534_v9 }
 0x40b   : > { %v547_v11 = vpop.xlane.xlu1 %546 }
 0x40c   : > { %v548_v12 = vadd.f32 %v547_v11, %v537_v10 }
 0x40e   : > { %549 = vst.msk [vmem:[#allocation6] sm:$0xff] %vm535_vm7, %v548_v12 }
 0x40f PF: > { %p813_p12 = scmp.ne.s32.totalorder %s1248_s26, 1 }
 0x411   : > { %553 = sbr.rel (%p813_p12) target bundleno = 1621 (0x655), region = 72 }
 0x416   : > { %v555_v13 = vld [vmem:[#allocation4] sm:$0xff]  ;;  %v566_v14 = vld [vmem:[#allocation5] sm:$0xff]  ;;  %v567_v15 = vld [vmem:[#allocation6] sm:$0xff]  ;;  %v1287_v16 = vmov 0   ;;  %v571_v19 = vstv %s1588_s14  ;;  %vm554_vm9 = vcmp.le.f32.partialorder %v1612_v36, 1.96 }
 0x417   : > { %995 = vset.pattern.permute.xlu0 %v1287_v16  ;;  %v568_v17 = vmul.f32 1e-45, %v567_v15  ;;  %996 = vset.pattern.permute.xlu1 %v1287_v16  ;;  %v581_v33 = vld [vmem:[#allocation7] sm:$0xff]  ;;  %vm601_vm10 = vcmask 7168   ;;  %v585_v42 = vld [vmem:[#allocation8] sm:$0xff] }
 0x418   : > { %558 = vperm.xlu0 %995, %v555_v13  }
 0x419   : > { %v569_v18 = vadd.f32 %v568_v17, %v566_v14 }
 0x41b   : > { %997 = vrcp.f32 %v569_v18 }
 0x428   : > { %v998_v20 = vpop.eup %997 }
 0x429   : > { %v573_v21 = vmul.f32 %v998_v20, %v571_v19 }
 0x42b   : > { %576 = vperm.xlu0 %995, %v573_v21  }
 0x493   : > { %v559_v22 = vpop.permute.xlu0 %558 }
 0x494   : > { %v561_v23 = vsub.f32 %v509_v52, %v559_v22 }
 0x496   : > { %v562_v24 = vmul.f32 1.442695, %v561_v23 }
 0x498   : > { %999 = vpow2.f32 %v562_v24 }
 0x4a5   : > { %v1000_v25 = vpop.eup %999 }
 0x4a6   : > { %v564_v26 = vsel %vm554_vm9, %v1000_v25, 0.0  ;;  %v577_v30 = vpop.permute.xlu0 %576 }
 0x4a7   : > { %v565_v28 = vmax.f32 %v564_v26, 1e-45 }
 0x4a9   : > { %v570_v29 = vmul.f32 %v565_v28, %v1608_v27 }
 0x4ab   : > { %v579_v31 = vmul.f32 %v577_v30, %v570_v29 }
 0x4ad   : > { %v580_v32 = vsel %vm508_vm6, %v579_v31, -1e+30 }
 0x4ae   : > { %582 = vmax.xlane.f32.xlu1 %v580_v32 }
 0x537   : > { %v583_v34 = vpop.xlane.xlu1 %582 }
 0x538   : > { %v584_v35 = vmax.f32 %v581_v33, %v583_v34 }
 0x53a   : > { %v586_v37 = vsub.f32 %v581_v33, %v584_v35  ;;  %603 = vst.msk [vmem:[#allocation7] sm:$0xff] %vm601_vm10, %v584_v35  ;;  %592 = vperm.xlu1 %996, %v584_v35  }
 0x53c   : > { %v587_v27 = vmul.f32 1.442695, %v586_v37 }
 0x5b5   : > { %v593_v36 = vpop.permute.xlu1 %592 }
 0x5b6   : > { %v595_v38 = vsub.f32 %v580_v32, %v593_v36 }
 0x5b8   : > { %v596_v39 = vmul.f32 1.442695, %v595_v38 }
 0x5ba   : > { %1001 = vpow2.f32 %v596_v39 }
 0x5bb   : > { %1003 = vpow2.f32 %v587_v27 }
 0x5c7   : > { %v1002_v40 = vpop.eup %1001 }
 0x5c8   : > { %598 = vadd.xlane.f32.xlu0 %v1002_v40  ;;  %v1004_v41 = vpop.eup %1003 }
 0x5c9   : > { %v589_v43 = vmul.f32 %v1004_v41, %v585_v42 }
 0x651   : > { %v599_v44 = vpop.xlane.xlu0 %598 }
 0x652   : > { %v600_v45 = vadd.f32 %v599_v44, %v589_v43 }
 0x654   : > { %602 = vst.msk [vmem:[#allocation8] sm:$0xff] %vm601_vm10, %v600_v45 }
 0x655 PF: > { %p604_p10 = scmp.eq.s32.totalorder %s1244_s4, 3 }
 0x657   : > { %p605_p9 = pnand %p604_p10, %p407_p4 }
 0x659   : > { %608 = sbr.rel (%p605_p9) target bundleno = 1776 (0x6f0), region = 76 }
 0x65e   : > { %v610_v46 = vld [vmem:[#allocation8] sm:$0xff]  ;;  %v1288_v47 = vmov 0   ;;  %v609_v49 = vld [vmem:[#allocation7] sm:$0xff] }
 0x65f   : > { %1005 = vset.pattern.permute.xlu0 %v1288_v47  ;;  %1006 = vlog2.f32 %v610_v46  ;;  %v614_v51 = vld [vmem:[#allocation3] sm:$0xff] }
 0x66c   : > { %v1007_v48 = vpop.eup %1006 }
 0x66d   : > { %v612_v50 = vmul.f32 0.6931472, %v1007_v48 }
 0x66f   : > { %v613_v52 = vadd.f32 %v612_v50, %v609_v49 }
 0x671   : > { %v615_v53 = vsub.f32 %v613_v52, %v614_v51 }
 0x673   : > { %618 = vperm.xlu0 %1005, %v615_v53  }
 0x6ee   : > { %v619_v54 = vpop.permute.xlu0 %618 }
 0x6ef   : > { %621 = vst [vmem:[%s1590_s6] sm:$0xff] %v619_v54 }
 0x6f0 PF: > { %s1757_s16 = sld [smem:[#allocation25_spill]]  ;;  %s636_s2 = sshll.u32 %s1590_s6, 4  ;;  %s637_s2 = int_to_ptr.vmem [resolvable:$true] %s636_s2 }
 0x6f1   : > { %s1759_s8 = sld [smem:[#allocation39_spill]]  ;;  %s623_s18 = scalar_lea.sflag [#allocation12], %s1553_s1 }
 0x6f2   : > { %s1120_s19 = scalar_lea.vmem %s637_s2, 128  ;;  %s1289_s20 = smov [#allocation18]  }
 0x6f3   : > { %p1121_p2 = scmp.ne.s32.totalorder %s637_s2, %s1120_s19  ;;  %s1124_s23 = sshll.u32 %s1289_s20, 4  ;;  %s1125_s23 = int_to_ptr.vmem [resolvable:$false] %s1124_s23 }
 0x6f4   : > { %s1126_s17 = scalar_lea.vmem %s1125_s23, 256  ;;  %p1127_p0 = scmp.lt.s32.totalorder %s637_s2, %s1125_s23 }
 0x6f5   : > { %p1122_p1 = pnand %p1121_p2, %p1456_p8  ;;  %p1128_p7 = scmp.lt.s32.totalorder %s1126_s17, %s1120_s19 }
 0x6f6   : > { %s815_s26 = sshll.u32 %s1757_s16, 7 }
 0x6f7   : > { %s634_s5 = scalar_lea.hbm %s1759_s8, %s815_s26  ;;  %p1123_p3 = pneg %p1122_p1 }
 0x6f8   : > { %p1129_p5 = por %p1128_p7, %p1127_p0 }
 0x6fa   : > { %p1130_p6 = pnand %p1129_p5, %p1123_p3 }
 0x6fc   : > { %1133 = shalt.err (!%p1130_p6)
}
 0x6fd   : > { %s1134_s7 = scalar_lea.hbm %s634_s5, 128  ;;  %s1138_s10 = scalar_lea.hbm %s1759_s8, 256 }
 0x6fe   : > { %p1135_p4 = scmp.ne.s32.totalorder %s634_s5, %s1134_s7  ;;  %p1139_p12 = scmp.lt.s32.totalorder %s634_s5, %s1759_s8 }
 0x6ff   : > { %p1140_p10 = scmp.lt.s32.totalorder %s1138_s10, %s1134_s7 }
 0x700   : > { %p1136_p13 = pnand %p1135_p4, %p1456_p8 }
 0x701   : > { %p1141_p9 = por %p1140_p10, %p1139_p12 }
 0x702   : > { %p1137_p11 = pneg %p1136_p13 }
 0x704   : > { %p1142_p2 = pnand %p1141_p9, %p1137_p11 }
 0x706   : > { %1145 = shalt.err (!%p1142_p2)
}
 0x707   : > { %839 = dma.vmem_to_hbm [thread:$0]  (%p1456_p8), %s637_s2, 128, %s634_s5, %s623_s18  }
 0x708 PF: > { %s1760_s30 = sld [smem:[#allocation28_spill]] }
 0x709   : > { %s1761_s12 = sld [smem:[#allocation24_spill]] }
 0x70a   : > { %s1762_s27 = sld [smem:[#allocation35_spill]] }
 0x70e   : > { %p859_p1 = scmp.ge.s32.totalorder %s1760_s30, 2 }
 0x70f   : > { %s648_s29 = sand.u32 1, %s1761_s12  }
 0x710   : > { %p1763_p3 = scmp.ne.s32.totalorder %s1762_s27, 0  ;;  %s649_s14 = scalar_lea.sflag [#allocation12], %s648_s29 }
 0x712   : > { %p855_p0 = pnand %p859_p1, %p1763_p3 }
 0x714   : > { %p856_p7 = pneg %p855_p0 }
 0x716   : > { %1215 = dma.done.wait (%p856_p7), %s649_s14, 128  }
 0x717   : > { %1217 = vsyncadd (%p856_p7), %s649_s14, 4294967168  ;;  %s28_s6 = sadd.s32 1, %s1760_s30   ;;  %s1765_s4 = sld [smem:[#allocation31_spill]] }
 0x718   : > { %p1662_p5 = scmp.ge.s32.totalorder %s28_s6, 18   ;;  %s1766_s26 = sld [smem:[#allocation34_spill]] }
 0x719   : > { %s1767_s13 = sld [smem:[#allocation26_spill]]  ;;  %s1772_s20 = smov %s1224_s21 }
 0x71a   : > { %s1768_s27 = sld [smem:[#allocation27_spill]]  ;;  %s1773_s21 = smov %s1228_s22 }
 0x71b   : > { %s1769_s0 = sld [smem:[#allocation29_spill]]  ;;  %s1775_s23 = smov %s1236_s24 }
 0x71c   : > { %s1770_s29 = sld [smem:[#allocation30_spill]]  ;;  %s1776_s24 = smov %s1240_s25 }
 0x71d   : > { %s1771_s30 = sld [smem:[#allocation32_spill]]  ;;  %s1774_s22 = smov %s1765_s4 }
 0x71e   : > { %s1777_s25 = smov %s1766_s26  ;;  %s1778_s4 = smov %s1256_s28 }
 0x71f   : > { %s1779_s26 = smov %s1767_s13  ;;  %27 = sbr.rel (!%p1662_p5) target bundleno = 20 (0x14), region = 142 }
 0x721   : > { %s1780_s28 = smov %s1769_s0 }
 0x724   :  { %654 = vsyncpa [#allocation11], 1 }
 0x725   :  { %656 = vsyncpa [#allocation11 + $0x1], 1 }
 0x726   :  { %657 = vsyncpa [#allocation14], 1 }
 0x727   :  { %659 = vsyncpa [#allocation14 + $0x1], 1 }
 0x728   :  { %660 = vsyncpa [#allocation17], 1 }
 0x729   :  { %662 = vsyncpa [#allocation17 + $0x1], 1 }
 0x72a   :  { %663 = vsyncpa [#allocation12], 1 }
 0x72b   :  { %665 = vsyncpa [#allocation12 + $0x1], 1 }

</bundles_post_ra>
